<compile_context>
chip_gen: v5e
topology: v5e:2x2
jax: 0.10.0
libtpu: 0.0.40
codegen_flags: <defaults>
</compile_context>

<pallas_src>
import math

import jax
import jax.numpy as jnp
from jax import lax
from jax.experimental import pallas as pl
from jax.experimental.pallas import tpu as pltpu


def _round_up(x, m):
    return ((x + m - 1) // m) * m


def _make_grafin_kernel(k_dim, tm):
    """Kernel factory closing over the (true) embedding dim K and row tile tm."""
    inv_sqrt_k = 1.0 / math.sqrt(k_dim)

    def kernel(y_ref, d_ref, l_ref, out_ref, ytdy_acc, trl_acc, trd_acc):
        i = pl.program_id(0)

        @pl.when(i == 0)
        def _init():
            ytdy_acc[...] = jnp.zeros_like(ytdy_acc)
            trl_acc[...] = jnp.zeros_like(trl_acc)
            trd_acc[...] = jnp.zeros_like(trd_acc)

        Y = y_ref[...]          # (Np, K)  bf16, VMEM-resident across the grid
        D_blk = d_ref[...]      # (tm, Np) bf16, row block i of D
        L_blk = l_ref[...]      # (tm, Np) bf16, row block i of L

        # MXU: (tm, K) = (tm, Np) @ (Np, K), f32 accumulation.
        LY = jnp.dot(L_blk, Y, preferred_element_type=jnp.float32)
        DY = jnp.dot(D_blk, Y, preferred_element_type=jnp.float32)

        # Row block of Y matching this row block of D/L.
        start = pl.multiple_of(i * tm, 8)
        Y_blk = y_ref[pl.ds(start, tm), :].astype(jnp.float32)   # (tm, K)

        # Trace partials: tr(Y^T M Y) = sum((M@Y) * Y)  -- no (K,K) matmul.
        trl_acc[...] += jnp.sum(LY * Y_blk, keepdims=True)       # (1, 1)
        trd_acc[...] += jnp.sum(DY * Y_blk, keepdims=True)       # (1, 1)

        # (K, K) partial of Y^T D Y: contract over the tm rows (A^T @ B form).
        dn = (((0,), (0,)), ((), ()))
        ytdy_acc[...] += lax.dot_general(
            Y_blk, DY, dn, preferred_element_type=jnp.float32)

        @pl.when(i == pl.num_programs(0) - 1)
        def _fin():
            ytdy = ytdy_acc[...]                                   # (K, K) f32
            tr_l = trl_acc[...]                                    # (1, 1)
            tr_d = trd_acc[...]                                    # (1, 1)
            fro = jnp.sqrt(jnp.sum(ytdy * ytdy, keepdims=True))    # (1, 1)

            loss_1 = tr_l / tr_d
            # || A/||A||_F - I/sqrt(K) ||_F = sqrt(2 - 2*tr(A)/(||A||_F*sqrt(K)))
            loss_2 = jnp.sqrt(jnp.maximum(
                2.0 - 2.0 * tr_d * inv_sqrt_k / fro, 0.0))
            out_ref[...] = loss_1 + loss_2

    return kernel


def _grafin_forward(Y, D, L, *, row_tile=512, compute_dtype=jnp.bfloat16):
    """One GraFinLoss._forward() call as a single tiled pallas_call."""
    N, K = Y.shape
    assert D.shape == (N, N) and L.shape == (N, N)

    itemsize = jnp.dtype(compute_dtype).itemsize
    row_tile = max(8, _round_up(row_tile, 8))
    if N <= row_tile:
        tm = _round_up(N, 8)                # single tile covering all rows
    else:
        tm = row_tile
        # Keep 2 inputs x 2 double-buffers of (tm, Np) inside the VMEM budget.
        budget = 40 * 1024 * 1024
        while tm > 128 and 4 * tm * _round_up(N, tm) * itemsize > budget:
            tm //= 2
    Np = _round_up(N, tm)

    # Zero-padding rows/cols does not change Y^T L Y / Y^T D Y.
    if Np != N:
        pad = Np - N
        Y = jnp.pad(Y, ((0, pad), (0, 0)))
        D = jnp.pad(D, ((0, pad), (0, pad)))
        L = jnp.pad(L, ((0, pad), (0, pad)))

    # bf16 operands for the MXU (and half the HBM bytes); accumulation is f32.
    Yc = Y.astype(compute_dtype)
    Dc = D.astype(compute_dtype)
    Lc = L.astype(compute_dtype)

    grid = (Np // tm,)
    kernel = _make_grafin_kernel(K, tm)

    out = pl.pallas_call(
        kernel,
        out_shape=jax.ShapeDtypeStruct((1, 1), jnp.float32),
        grid_spec=pltpu.PrefetchScalarGridSpec(
            num_scalar_prefetch=0,
            grid=grid,
            in_specs=[
                pl.BlockSpec((Np, K), lambda i: (0, 0)),    # Y: resident
                pl.BlockSpec((tm, Np), lambda i: (i, 0)),   # D: row block i
                pl.BlockSpec((tm, Np), lambda i: (i, 0)),   # L: row block i
            ],
            out_specs=pl.BlockSpec((1, 1), lambda i: (0, 0)),
            scratch_shapes=[
                pltpu.VMEM((K, K), jnp.float32),   # Y^T D Y accumulator
                pltpu.VMEM((1, 1), jnp.float32),   # tr(Y^T L Y)
                pltpu.VMEM((1, 1), jnp.float32),   # tr(Y^T D Y)
            ],
        ),
        compiler_params=pltpu.CompilerParams(
            dimension_semantics=("arbitrary",),          # reduction over row blocks
            vmem_limit_bytes=48 * 1024 * 1024,           # safe on v5e/v6e/v7x (64 MiB phys)
        ),
    )(Yc, Dc, Lc)
    return out[0, 0]


def grafin_loss(alpha, Y, D_rp2rp, L_rp2rp, D_rp2ap, L_rp2ap):
    """Full GraFinLoss.forward."""
    # TODO(synk): for tiny N both _forward passes + the alpha blend could be
    # fused into one pallas_call (and split across v7x's 2 TCs); kept as two
    # launches for clarity.
    M = D_rp2rp.shape[0]
    loss_rp = _grafin_forward(Y[:M], D_rp2rp, L_rp2rp)
    loss_ap = _grafin_forward(Y, D_rp2ap, L_rp2ap)
    return alpha * loss_rp + (1.0 - alpha) * loss_ap


def _make_graph_mats(key, n):
    """Deterministic symmetric PD degree matrix D and Laplacian-like L, (n, n)."""
    a = jax.random.uniform(key, (n, n), dtype=jnp.float32)
    adj = 0.5 * (a + a.T)
    adj = adj * (1.0 - jnp.eye(n, dtype=jnp.float32))    # zero diagonal
    deg = jnp.sum(adj, axis=1)
    D = jnp.diag(deg) + jnp.eye(n, dtype=jnp.float32)    # strictly PD
    L = D - adj
    return D, L


if __name__ == "__main__":
    key = jax.random.PRNGKey(0)
    k_y, k_rp, k_ap = jax.random.split(key, 3)

    N, M, K = 16, 8, 8          # Y: (N, K); rp2rp graphs on first M rows; rp2ap on all N
    alpha = 0.3

    Y = jax.random.normal(k_y, (N, K), dtype=jnp.float32)
    D_rp2rp, L_rp2rp = _make_graph_mats(k_rp, M)
    D_rp2ap, L_rp2ap = _make_graph_mats(k_ap, N)

    loss = grafin_loss(alpha, Y, D_rp2rp, L_rp2rp, D_rp2ap, L_rp2ap)
    loss = jax.block_until_ready(loss)

    # sanity check against pure-JAX f32 reference
    def ref_forward(Yx, D, L):
        YtLY = Yx.T @ L @ Yx
        YtDY = Yx.T @ D @ Yx
        l1 = jnp.trace(YtLY) / jnp.trace(YtDY)
        k = YtDY.shape[0]
        l2 = jnp.linalg.norm(
            YtDY / jnp.linalg.norm(YtDY) - jnp.eye(k) / math.sqrt(k))
        return l1 + l2

    ref = alpha * ref_forward(Y[:M], D_rp2rp, L_rp2rp) + \
        (1.0 - alpha) * ref_forward(Y, D_rp2ap, L_rp2ap)
    # bf16 MXU operands -> relaxed tolerance (reference is f32)
    assert jnp.allclose(loss, ref, rtol=2e-2, atol=2e-2), (loss, ref)

    print("KERNEL_OK")
</pallas_src>

<mosaic_0001>
module attributes {stable_mosaic.version = 11 : i64} {
  func.func @kernel(%arg0: i32, %arg1: memref<8x8xbf16, #tpu.memory_space<vmem>>, %arg2: memref<8x8xbf16, #tpu.memory_space<vmem>>, %arg3: memref<8x8xbf16, #tpu.memory_space<vmem>>, %arg4: memref<1x1xf32, #tpu.memory_space<vmem>>, %arg5: memref<8x8xf32, #tpu.memory_space<vmem>>, %arg6: memref<1x1xf32, #tpu.memory_space<vmem>>, %arg7: memref<1x1xf32, #tpu.memory_space<vmem>>) attributes {dimension_semantics = [#tpu.dimension_semantics<arbitrary>], iteration_bounds = array<i64: 1>, scalar_prefetch = 0 : i64, scratch_operands = 3 : i64, tpu.core_type = #tpu.core_type<tc>, window_params = [{pipeline_mode = #tpu.pipeline_mode<synchronous>, transform_indices = @transform_0, window_bounds = array<i64: 8, 8>}, {transform_indices = @transform_1, window_bounds = array<i64: 8, 8>}, {transform_indices = @transform_2, window_bounds = array<i64: 8, 8>}, {pipeline_mode = #tpu.pipeline_mode<synchronous>, transform_indices = @transform_3, window_bounds = array<i64: 1, 1>}]} {
    %c0_i32 = arith.constant 0 : i32
    %0 = arith.cmpi eq, %arg0, %c0_i32 : i32
    %1 = arith.extui %0 : i1 to i32
    %c0_i32_0 = arith.constant 0 : i32
    %2 = arith.cmpi ne, %1, %c0_i32_0 : i32
    scf.if %2 {
      %cst_25 = arith.constant 0.000000e+00 : f32
      %38 = vector.broadcast %cst_25 : f32 to vector<8x8xf32>
      %c0_26 = arith.constant 0 : index
      %c0_27 = arith.constant 0 : index
      %39 = vector.load %arg5[%c0_26, %c0_27] : memref<8x8xf32, #tpu.memory_space<vmem>>, vector<8x8xf32>
      tpu.vector_store %arg5[%c0_26, %c0_27], %38 {strides = array<i32>} : memref<8x8xf32, #tpu.memory_space<vmem>>, vector<8x8xf32>,
      %cst_28 = arith.constant 0.000000e+00 : f32
      %40 = vector.broadcast %cst_28 : f32 to vector<1x1xf32>
      %c0_29 = arith.constant 0 : index
      %c0_30 = arith.constant 0 : index
      %41 = vector.load %arg6[%c0_29, %c0_30] : memref<1x1xf32, #tpu.memory_space<vmem>>, vector<1x1xf32>
      tpu.vector_store %arg6[%c0_29, %c0_30], %40 {strides = array<i32>} : memref<1x1xf32, #tpu.memory_space<vmem>>, vector<1x1xf32>,
      %cst_31 = arith.constant 0.000000e+00 : f32
      %42 = vector.broadcast %cst_31 : f32 to vector<1x1xf32>
      %c0_32 = arith.constant 0 : index
      %c0_33 = arith.constant 0 : index
      %43 = vector.load %arg7[%c0_32, %c0_33] : memref<1x1xf32, #tpu.memory_space<vmem>>, vector<1x1xf32>
      tpu.vector_store %arg7[%c0_32, %c0_33], %42 {strides = array<i32>} : memref<1x1xf32, #tpu.memory_space<vmem>>, vector<1x1xf32>,
    } else {
    }
    %c0 = arith.constant 0 : index
    %c0_1 = arith.constant 0 : index
    %3 = vector.load %arg1[%c0, %c0_1] : memref<8x8xbf16, #tpu.memory_space<vmem>>, vector<8x8xbf16>
    %c0_2 = arith.constant 0 : index
    %c0_3 = arith.constant 0 : index
    %4 = vector.load %arg2[%c0_2, %c0_3] : memref<8x8xbf16, #tpu.memory_space<vmem>>, vector<8x8xbf16>
    %c0_4 = arith.constant 0 : index
    %c0_5 = arith.constant 0 : index
    %5 = vector.load %arg3[%c0_4, %c0_5] : memref<8x8xbf16, #tpu.memory_space<vmem>>, vector<8x8xbf16>
    %cst = arith.constant dense<0.000000e+00> : vector<8x8xf32>
    %6 = tpu.matmul %5, %3, %cst {dimension_numbers = #tpu.dot_dimension_numbers<[1], [0], [0], [1], [0, 0, 1, 1], [], []>} : vector<8x8xbf16>, vector<8x8xbf16>, vector<8x8xf32> -> vector<8x8xf32>
    %cst_6 = arith.constant dense<0.000000e+00> : vector<8x8xf32>
    %7 = tpu.matmul %4, %3, %cst_6 {dimension_numbers = #tpu.dot_dimension_numbers<[1], [0], [0], [1], [0, 0, 1, 1], [], []>} : vector<8x8xbf16>, vector<8x8xbf16>, vector<8x8xf32> -> vector<8x8xf32>
    %c8_i32 = arith.constant 8 : i32
    %8 = arith.muli %arg0, %c8_i32 : i32
    %9 = tpu.assume_multiple %8, 8 : i32
    %10 = arith.index_cast %9 : i32 to index
    %c0_7 = arith.constant 0 : index
    %11 = vector.load %arg1[%10, %c0_7] : memref<8x8xbf16, #tpu.memory_space<vmem>>, vector<8x8xbf16>
    %12 = arith.extf %11 : vector<8x8xbf16> to vector<8x8xf32>
    %c0_8 = arith.constant 0 : index
    %c0_9 = arith.constant 0 : index
    %13 = vector.load %arg6[%c0_8, %c0_9] : memref<1x1xf32, #tpu.memory_space<vmem>>, vector<1x1xf32>
    %14 = arith.mulf %6, %12 : vector<8x8xf32>
    %15 = vector.shape_cast %14 : vector<8x8xf32> to vector<1x8x8xf32>
    %cst_10 = arith.constant dense<0.000000e+00> : vector<1xf32>
    %16 = vector.multi_reduction <add>, %15, %cst_10 [1, 2] : vector<1x8x8xf32> to vector<1xf32>
    %17 = vector.shape_cast %16 : vector<1xf32> to vector<1x1x1xf32>
    %18 = vector.extract %17[0, 0, 0] : f32 from vector<1x1x1xf32>
    %19 = vector.broadcast %18 : f32 to vector<1x1xf32>
    %20 = arith.addf %13, %19 : vector<1x1xf32>
    %c0_11 = arith.constant 0 : index
    %c0_12 = arith.constant 0 : index
    %21 = vector.load %arg6[%c0_11, %c0_12] : memref<1x1xf32, #tpu.memory_space<vmem>>, vector<1x1xf32>
    tpu.vector_store %arg6[%c0_11, %c0_12], %20 {strides = array<i32>} : memref<1x1xf32, #tpu.memory_space<vmem>>, vector<1x1xf32>,
    %c0_13 = arith.constant 0 : index
    %c0_14 = arith.constant 0 : index
    %22 = vector.load %arg7[%c0_13, %c0_14] : memref<1x1xf32, #tpu.memory_space<vmem>>, vector<1x1xf32>
    %23 = arith.mulf %7, %12 : vector<8x8xf32>
    %24 = vector.shape_cast %23 : vector<8x8xf32> to vector<1x8x8xf32>
    %cst_15 = arith.constant dense<0.000000e+00> : vector<1xf32>
    %25 = vector.multi_reduction <add>, %24, %cst_15 [1, 2] : vector<1x8x8xf32> to vector<1xf32>
    %26 = vector.shape_cast %25 : vector<1xf32> to vector<1x1x1xf32>
    %27 = vector.extract %26[0, 0, 0] : f32 from vector<1x1x1xf32>
    %28 = vector.broadcast %27 : f32 to vector<1x1xf32>
    %29 = arith.addf %22, %28 : vector<1x1xf32>
    %c0_16 = arith.constant 0 : index
    %c0_17 = arith.constant 0 : index
    %30 = vector.load %arg7[%c0_16, %c0_17] : memref<1x1xf32, #tpu.memory_space<vmem>>, vector<1x1xf32>
    tpu.vector_store %arg7[%c0_16, %c0_17], %29 {strides = array<i32>} : memref<1x1xf32, #tpu.memory_space<vmem>>, vector<1x1xf32>,
    %c0_18 = arith.constant 0 : index
    %c0_19 = arith.constant 0 : index
    %31 = vector.load %arg5[%c0_18, %c0_19] : memref<8x8xf32, #tpu.memory_space<vmem>>, vector<8x8xf32>
    %cst_20 = arith.constant dense<0.000000e+00> : vector<8x8xf32>
    %32 = tpu.matmul %12, %7, %cst_20 {dimension_numbers = #tpu.dot_dimension_numbers<[0], [0], [1], [1], [0, 1, 1, 1], [], []>} : vector<8x8xf32>, vector<8x8xf32>, vector<8x8xf32> -> vector<8x8xf32>
    %33 = arith.addf %31, %32 : vector<8x8xf32>
    %c0_21 = arith.constant 0 : index
    %c0_22 = arith.constant 0 : index
    %34 = vector.load %arg5[%c0_21, %c0_22] : memref<8x8xf32, #tpu.memory_space<vmem>>, vector<8x8xf32>
    tpu.vector_store %arg5[%c0_21, %c0_22], %33 {strides = array<i32>} : memref<8x8xf32, #tpu.memory_space<vmem>>, vector<8x8xf32>,
    %c0_i32_23 = arith.constant 0 : i32
    %35 = arith.cmpi eq, %arg0, %c0_i32_23 : i32
    %36 = arith.extui %35 : i1 to i32
    %c0_i32_24 = arith.constant 0 : i32
    %37 = arith.cmpi ne, %36, %c0_i32_24 : i32
    scf.if %37 {
      %c0_25 = arith.constant 0 : index
      %c0_26 = arith.constant 0 : index
      %38 = vector.load %arg5[%c0_25, %c0_26] : memref<8x8xf32, #tpu.memory_space<vmem>>, vector<8x8xf32>
      %c0_27 = arith.constant 0 : index
      %c0_28 = arith.constant 0 : index
      %39 = vector.load %arg6[%c0_27, %c0_28] : memref<1x1xf32, #tpu.memory_space<vmem>>, vector<1x1xf32>
      %c0_29 = arith.constant 0 : index
      %c0_30 = arith.constant 0 : index
      %40 = vector.load %arg7[%c0_29, %c0_30] : memref<1x1xf32, #tpu.memory_space<vmem>>, vector<1x1xf32>
      %41 = arith.mulf %38, %38 : vector<8x8xf32>
      %42 = vector.shape_cast %41 : vector<8x8xf32> to vector<1x8x8xf32>
      %cst_31 = arith.constant dense<0.000000e+00> : vector<1xf32>
      %43 = vector.multi_reduction <add>, %42, %cst_31 [1, 2] : vector<1x8x8xf32> to vector<1xf32>
      %44 = vector.shape_cast %43 : vector<1xf32> to vector<1x1x1xf32>
      %45 = vector.extract %44[0, 0, 0] : f32 from vector<1x1x1xf32>
      %46 = vector.broadcast %45 : f32 to vector<1x1xf32>
      %47 = math.sqrt %46 : vector<1x1xf32>
      %48 = arith.divf %39, %40 : vector<1x1xf32>
      %cst_32 = arith.constant 2.000000e+00 : f32
      %49 = vector.broadcast %cst_32 : f32 to vector<1x1xf32>
      %50 = arith.mulf %49, %40 : vector<1x1xf32>
      %cst_33 = arith.constant 0.353553385 : f32
      %51 = vector.broadcast %cst_33 : f32 to vector<1x1xf32>
      %52 = arith.mulf %50, %51 : vector<1x1xf32>
      %53 = arith.divf %52, %47 : vector<1x1xf32>
      %cst_34 = arith.constant 2.000000e+00 : f32
      %54 = vector.broadcast %cst_34 : f32 to vector<1x1xf32>
      %55 = arith.subf %54, %53 : vector<1x1xf32>
      %cst_35 = arith.constant 0.000000e+00 : f32
      %56 = vector.broadcast %cst_35 : f32 to vector<1x1xf32>
      %57 = arith.maximumf %55, %56 : vector<1x1xf32>
      %58 = math.sqrt %57 : vector<1x1xf32>
      %59 = arith.addf %48, %58 : vector<1x1xf32>
      %c0_36 = arith.constant 0 : index
      %c0_37 = arith.constant 0 : index
      %60 = vector.load %arg4[%c0_36, %c0_37] : memref<1x1xf32, #tpu.memory_space<vmem>>, vector<1x1xf32>
      tpu.vector_store %arg4[%c0_36, %c0_37], %59 {strides = array<i32>} : memref<1x1xf32, #tpu.memory_space<vmem>>, vector<1x1xf32>,
    } else {
    }
    return
  }
  func.func @transform_0(%arg0: i32) -> (i32, i32) {
    %c0_i32 = arith.constant 0 : i32
    %c0_i32_0 = arith.constant 0 : i32
    %c0_i32_1 = arith.constant 0 : i32
    return %c0_i32, %c0_i32_0 : i32, i32
  }
  func.func @transform_1(%arg0: i32) -> (i32, i32) {
    %c0_i32 = arith.constant 0 : i32
    %c0_i32_0 = arith.constant 0 : i32
    return %arg0, %c0_i32 : i32, i32
  }
  func.func @transform_2(%arg0: i32) -> (i32, i32) {
    %c0_i32 = arith.constant 0 : i32
    %c0_i32_0 = arith.constant 0 : i32
    return %arg0, %c0_i32 : i32, i32
  }
  func.func @transform_3(%arg0: i32) -> (i32, i32) {
    %c0_i32 = arith.constant 0 : i32
    %c0_i32_0 = arith.constant 0 : i32
    %c0_i32_1 = arith.constant 0 : i32
    return %c0_i32, %c0_i32_0 : i32, i32
  }
}

</mosaic_0001>

<bundles_post_ra>
// kernel: tpu_custom_call.1
= control target key start
LH: loop header
LB: loop body
LE: loop exit
PB: predicated region body
PF: predicated region fallthrough
CT: control target
= control target key end

     0   :  { %8 = vsyncpa [#allocation6], 0  ;;  %s474_s0 = inlined_call_operand.hbm [shape: bf16[8,8], index: 0, kind: input, shape index: {}]   ;;  %s475_s1 = inlined_call_operand.hbm [shape: bf16[8,8], index: 1, kind: input, shape index: {}]   ;;  %s476_s2 = inlined_call_operand.hbm [shape: bf16[8,8], index: 2, kind: input, shape index: {}]   ;;  %s477_s3 = inlined_call_operand.hbm [shape: f32[1,1], index: 3, kind: output, shape index: {}]  }
   0x1   :  { %9 = vsyncpa [#allocation9], 0  ;;  %s27_s14 = sshll.u32 %s475_s1, 4  ;;  %s28_s14 = int_to_ptr.hbm [resolvable:$true] %s27_s14 }
   0x2   :  { %10 = vsyncpa [#allocation7], 0  ;;  %s424_s15 = smov [#allocation8]   ;;  %s16_s19 = sshll.u32 %s474_s0, 4  ;;  %s17_s19 = int_to_ptr.hbm [resolvable:$true] %s16_s19 }
   0x3   :  { %s29_s16 = sshll.u32 %s424_s15, 4  ;;  %s425_s20 = smov [#allocation5]   ;;  %s30_s16 = int_to_ptr.vmem [resolvable:$true] %s29_s16 }
   0x4   :  { %32 = dma.hbm_to_vmem [thread:$0]  %s28_s14, 64, %s30_s16, [#allocation9]  }
   0x5   :  { %s18_s21 = sshll.u32 %s425_s20, 4  ;;  %s38_s24 = sshll.u32 %s476_s2, 4  ;;  %s19_s21 = int_to_ptr.vmem [resolvable:$true] %s18_s21  ;;  %s39_s24 = int_to_ptr.hbm [resolvable:$true] %s38_s24 }
   0x6   :  { %21 = dma.hbm_to_vmem [thread:$0]  %s17_s19, 64, %s19_s21, [#allocation6]  }
   0x7   :  { %s426_s1 = smov [#allocation10]  }
   0x8   :  { %s40_s25 = sshll.u32 %s426_s1, 4  ;;  %s41_s25 = int_to_ptr.vmem [resolvable:$true] %s40_s25 }
   0x9   :  { %43 = dma.hbm_to_vmem [thread:$0]  %s39_s24, 64, %s41_s25, [#allocation9]  }
   0xa   :  { %418 = dma.done.wait [#allocation6], 64  }
   0xb   :  { %419 = vsyncadd [#allocation6], 4294967232 }
   0xc   :  { %420 = dma.done.wait [#allocation9], 128  }
   0xd   :  { %421 = vsyncadd [#allocation9], 4294967168  ;;  %vm73_vm0 = vcmask 1043456   ;;  %v111_v0 = vld [vmem:[#allocation5] sm:$0xf]  ;;  %vm61_vm1 = vcmask 64512  }
   0xe   :  { %v66_v1 = vld [vmem:[#allocation5] sm:$0xf]  ;;  %v112_v2 = vunpack.c.l.bf16 %v111_v0  ;;  %v68_v4 = vld [vmem:[#allocation10] sm:$0xf]  ;;  %v67_v5 = vld [vmem:[#allocation8] sm:$0xf] }
   0xf   :  { %v75_v3 = vsel %vm73_vm0, %v66_v1, 0  ;;  %v427_v15 = vmov 0.0   ;;  %vm63_vm2 = vcmask 0   ;;  %s428_s27 = smov [#allocation11]   ;;  %s287_s4 = sshll.u32 %s477_s3, 4  ;;  %s288_s4 = int_to_ptr.hbm [resolvable:$true] %s287_s4 }
  0x10   :  { %84 = vmatpush.bf16.msra.mxu0 %v75_v3  ;;  %100 = vmatpush.bf16.msra.mxu1 %v75_v3  ;;  %62 = vst.msk [vmem:[#allocation2] sm:$0xff] %vm61_vm1, %v427_v15  ;;  %s285_s28 = sshll.u32 %s428_s27, 4  ;;  %s286_s28 = int_to_ptr.vmem [resolvable:$true] %s285_s28 }
  0x11   :  { %145 = vxpose.xlu0.b32.start.end [1/1] (short) (narrow) %v112_v2, 8  ;;  %64 = vst.msk [vmem:[#allocation3] sm:$0x1] %vm63_vm2, %v427_v15 }
  0x12   :  { %65 = vst.msk [vmem:[#allocation4] sm:$0x1] %vm63_vm2, %v427_v15 }
  0x13   :  { %300 = vmatmul.msk.bf16.vlgmr.msra.gmra.mxu0 %vm61_vm1, %v68_v4  ;;  %301 = vmatmul.msk.bf16.vlgmr.msra.gmra.mxu1 %vm61_vm1, %v67_v5 }
  0x17   :  { %v144_v30 = vld [vmem:[#allocation2] sm:$0xff] }
  0x18   :  { %v113_v35 = vld [vmem:[#allocation3] sm:$0x1] }
  0x19   :  { %v129_v36 = vld [vmem:[#allocation4] sm:$0x1] }
  0x90   :  { %v86_v6 = vpop.f32.mrf.mxu0  ;;  %v102_v7 = vpop.f32.mrf.mxu1 }
  0x91   :  { %v114_v8 = vmul.f32 %v112_v2, %v86_v6  ;;  %v130_v9 = vmul.f32 %v112_v2, %v102_v7  ;;  %195 = vmatpush.msra.mxu2 %v102_v7 }
  0x93   :  { %v131_v10 = vsel %vm61_vm1, %v130_v9, 0.0  ;;  %v115_v11 = vsel %vm61_vm1, %v114_v8, 0.0 }
  0x94   :  { %132 = vadd.xlane.f32.xlu1 %v131_v10  ;;  %116 = vadd.xlane.f32.xlu0 %v115_v11 }
  0x98   :  { %v104_v12 = vpop.f32.mrf.mxu1  ;;  %v88_v13 = vpop.f32.mrf.mxu0 }
  0xb5   :  { %v161_v14 = vpop.trf.xlu0 }
  0xb6   :  { %302 = vmatmul.msk.f32.vlgmr.msra.gmra.mxu2 %vm61_vm1, %v161_v14 }
 0x107   :  { %v133_v16 = vpop.xlane.xlu1 %132  ;;  %v117_v17 = vpop.xlane.xlu0 %116 }
 0x108   :  { %v134_v18 = vrot.slane %v133_v16, 4  ;;  %v118_v19 = vrot.slane %v117_v17, 4 }
 0x10a   :  { %v135_v20 = vadd.f32 %v134_v18, %v133_v16  ;;  %v119_v21 = vadd.f32 %v118_v19, %v117_v17 }
 0x10c   :  { %v136_v22 = vrot.slane %v135_v20, 2  ;;  %v120_v23 = vrot.slane %v119_v21, 2 }
 0x10e   :  { %v121_v24 = vadd.f32 %v120_v23, %v119_v21  ;;  %v137_v25 = vadd.f32 %v136_v22, %v135_v20 }
 0x110   :  { %v122_v26 = vrot.slane %v121_v24, 1  ;;  %v138_v27 = vrot.slane %v137_v25, 1 }
 0x112   :  { %v123_v28 = vadd.f32 %v122_v26, %v121_v24  ;;  %v139_v29 = vadd.f32 %v138_v27, %v137_v25 }
 0x114   :  { %303 = vpush %v123_v28 }
 0x115   :  { %305 = vpush %v139_v29 }
 0x139   :  { %v197_v31 = vpop.f32.mrf.mxu2 }
 0x13a   :  { %v200_v32 = vadd.f32 %v197_v31, %v144_v30 }
 0x13c   :  { %201 = vst.msk [vmem:[#allocation2] sm:$0xff] %vm61_vm1, %v200_v32 }
 0x143   :  { %v205_v33 = vld [vmem:[#allocation2] sm:$0xff] }
 0x144   :  { %v208_v34 = vmul.f32 %v205_v33, %v205_v33 }
 0x145   :  { %s304_s0 = spop %303 }
 0x146   :  { %v209_v37 = vsel %vm61_vm1, %v208_v34, 0.0  ;;  %v125_v38 = vstv %s304_s0  ;;  %s306_s2 = spop %305 }
 0x147   :  { %210 = vadd.xlane.f32.xlu1 %v209_v37  ;;  %v126_v39 = vadd.f32 %v125_v38, %v113_v35  ;;  %v141_v40 = vstv %s306_s2 }
 0x148   :  { %v142_v41 = vadd.f32 %v141_v40, %v129_v36 }
 0x149   :  { %128 = vst.msk [vmem:[#allocation3] sm:$0x1] %vm63_vm2, %v126_v39 }
 0x14a   :  { %143 = vst.msk [vmem:[#allocation4] sm:$0x1] %vm63_vm2, %v142_v41 }
 0x150   :  { %v206_v27 = vld [vmem:[#allocation3] sm:$0x1] }
 0x151   :  { %v207_v62 = vld [vmem:[#allocation4] sm:$0x1] }
 0x152   :  { %v247_v3 = vmul.f32 2.0, %v207_v62  ;;  %vm237_vm9 = vweird.f32 %v207_v62  ;;  %v243_v18 = vand.u32 2147483648, %v207_v62  ;;  %v241_v20 = vand.u32 2147483647, %v207_v62 }
 0x154   :  { %v248_v7 = vmul.f32 0.35355338, %v247_v3  ;;  %v244_v23 = vor.u32 1.1754944e-38, %v243_v18  ;;  %vm242_vm12 = vcmp.eq.f32.partialorder %v241_v20, 8.507059e+37 }
 0x1ba   :  { %v211_v42 = vpop.xlane.xlu1 %210 }
 0x1bb   :  { %v212_v43 = vrot.slane %v211_v42, 4 }
 0x1bd   :  { %v213_v44 = vadd.f32 %v212_v43, %v211_v42 }
 0x1bf   :  { %v214_v45 = vrot.slane %v213_v44, 2 }
 0x1c1   :  { %v215_v46 = vadd.f32 %v214_v45, %v213_v44 }
 0x1c3   :  { %v216_v47 = vrot.slane %v215_v46, 1 }
 0x1c5   :  { %v217_v48 = vadd.f32 %v216_v47, %v215_v46 }
 0x1c7   :  { %307 = vpush %v217_v48 }
 0x1f8   :  { %s308_s26 = spop %307 }
 0x1f9   :  { %v219_v49 = vstv %s308_s26 }
 0x1fa   :  { %314 = vrsqrt.f32 %v219_v49  ;;  %vm227_vm3 = vcmp.eq.f32.partialorder %v219_v49, inf  ;;  %v230_v57 = vand.u32 2147483648, %v219_v49  ;;  %vm229_vm4 = vcmp.eq.f32.partialorder %v219_v49, 0.0 }
 0x200   :  { %v315_v50 = vpop.eup %314 }
 0x201   :  { %v221_v51 = vmul.f32 %v315_v50, %v219_v49 }
 0x203   :  { %v222_v52 = vmul.f32 %v315_v50, %v221_v51 }
 0x205   :  { %v223_v53 = vmul.f32 0.5, %v222_v52 }
 0x207   :  { %v224_v54 = vsub.f32 1.5, %v223_v53 }
 0x209   :  { %v225_v55 = vmul.f32 %v315_v50, %v224_v54 }
 0x20b   :  { %v226_v56 = vmul.f32 %v225_v55, %v219_v49 }
 0x20d   :  { %v228_v58 = vsel %vm227_vm3, %v219_v49, %v226_v56 }
 0x20e   :  { %v231_v59 = vsel %vm229_vm4, %v230_v57, %v228_v58 }
 0x20f   :  { %316 = vrcp.f32 %v231_v59  ;;  %v260_v0 = vand.u32 2147483648, %v231_v59  ;;  %v258_v2 = vand.u32 2147483647, %v231_v59  ;;  %vm254_vm6 = vweird.f32 %v231_v59 }
 0x210   :  { %318 = vrcp.f32 %v207_v62 }
 0x211   :  { %v261_v5 = vor.u32 1.1754944e-38, %v260_v0  ;;  %vm259_vm8 = vcmp.eq.f32.partialorder %v258_v2, 8.507059e+37 }
 0x215   :  { %v317_v60 = vpop.eup %316 }
 0x216   :  { %v250_v61 = vmul.f32 %v317_v60, %v231_v59  ;;  %vm255_vm5 = vweird.f32 %v317_v60  ;;  %v319_v8 = vpop.eup %318 }
 0x217   :  { %vm256_vm7 = vmor %vm254_vm6, %vm255_vm5  ;;  %v233_v12 = vmul.f32 %v319_v8, %v207_v62  ;;  %vm238_vm10 = vweird.f32 %v319_v8 }
 0x218   :  { %v251_v63 = vsub.f32 1.0, %v250_v61  ;;  %vm239_vm11 = vmor %vm237_vm9, %vm238_vm10 }
 0x219   :  { %v234_v14 = vsub.f32 1.0, %v233_v12 }
 0x21a   :  { %v252_v1 = vmul.f32 %v317_v60, %v251_v63 }
 0x21b   :  { %v235_v15 = vmul.f32 %v319_v8, %v234_v14 }
 0x21c   :  { %v253_v4 = vadd.f32 %v317_v60, %v252_v1 }
 0x21d   :  { %v236_v19 = vadd.f32 %v319_v8, %v235_v15 }
 0x21e   :  { %v257_v6 = vsel %vm256_vm7, %v317_v60, %v253_v4 }
 0x21f   :  { %v262_v9 = vsel %vm259_vm8, %v261_v5, %v257_v6  ;;  %v240_v24 = vsel %vm239_vm11, %v319_v8, %v236_v19 }
 0x220   :  { %v263_v10 = vmul.f32 %v262_v9, %v248_v7  ;;  %v245_v28 = vsel %vm242_vm12, %v244_v23, %v240_v24 }
 0x221   :  { %v246_v31 = vmul.f32 %v245_v28, %v206_v27 }
 0x222   :  { %v264_v11 = vsub.f32 2.0, %v263_v10 }
 0x224   :  { %v265_v13 = vmax.f32 %v264_v11, 0.0 }
 0x226   :  { %320 = vrsqrt.f32 %v265_v13  ;;  %vm273_vm13 = vcmp.eq.f32.partialorder %v265_v13, inf  ;;  %v276_v30 = vand.u32 2147483648, %v265_v13  ;;  %vm275_vm14 = vcmp.eq.f32.partialorder %v265_v13, 0.0 }
 0x22c   :  { %v321_v16 = vpop.eup %320 }
 0x22d   :  { %v267_v17 = vmul.f32 %v321_v16, %v265_v13 }
 0x22f   :  { %v268_v21 = vmul.f32 %v321_v16, %v267_v17 }
 0x231   :  { %v269_v22 = vmul.f32 0.5, %v268_v21 }
 0x233   :  { %v270_v25 = vsub.f32 1.5, %v269_v22 }
 0x235   :  { %v271_v26 = vmul.f32 %v321_v16, %v270_v25 }
 0x237   :  { %v272_v29 = vmul.f32 %v271_v26, %v265_v13 }
 0x239   :  { %v274_v32 = vsel %vm273_vm13, %v265_v13, %v272_v29 }
 0x23a   :  { %v277_v33 = vsel %vm275_vm14, %v276_v30, %v274_v32 }
 0x23b   :  { %v278_v34 = vadd.f32 %v277_v33, %v246_v31 }
 0x23d   :  { %279 = vst.msk [vmem:[#allocation11] sm:$0x1] %vm63_vm2, %v278_v34 }
 0x23e   :  { %290 = dma.vmem_to_hbm [thread:$0]  %s286_s28, 16, %s288_s4, [#allocation7]  }
 0x23f   :  { %422 = dma.done.wait [#allocation7], 16  }
 0x240   :  { %423 = vsyncadd [#allocation7], 4294967280 }
 0x241   :  { %295 = vsyncpa [#allocation6], 1 }
 0x242   :  { %296 = vsyncpa [#allocation9], 1 }
 0x243   :  { %297 = vsyncpa [#allocation7], 1 }

</bundles_post_ra>
